<compile_context>
chip_gen: v7x
topology: tpu7x:2x2x1
jax: 0.10.0
libtpu: 0.0.40
codegen_flags: <defaults>
</compile_context>

<pallas_src>
import functools

import jax
import jax.numpy as jnp
from jax.experimental import pallas as pl
from jax.experimental.pallas import tpu as pltpu

LANE = 128
TARGET_BLOCK_BYTES = 2 * 1024 * 1024   # ~2 MiB per input block (dtype-scaled)


def _round_up(x, m):
    return (x + m - 1) // m * m


def _sublane_multiple(dtype):
    # sublane tile requirement by element width
    return {4: 8, 2: 16, 1: 32}[jnp.dtype(dtype).itemsize]


def _huber_kernel(x_ref, t_ref, out_ref, acc_ref, *, delta, rows_valid,
                  row_tile, needs_mask):
    i = pl.program_id(0)
    last = pl.num_programs(0) - 1

    @pl.when(i == 0)
    def _():
        acc_ref[...] = jnp.zeros_like(acc_ref)

    # Load native dtype, cast to f32 in-register.
    x = x_ref[...].astype(jnp.float32)
    t = t_ref[...].astype(jnp.float32)

    err = t - x
    abs_e = jnp.abs(err)
    # Branchless Huber: m = min(|e|, delta); loss = m * (|e| - 0.5*m)
    #   |e| <  delta -> 0.5*|e|^2
    #   |e| >= delta -> delta*(|e| - 0.5*delta)   (matches torch at |e|==delta)
    m = jnp.minimum(abs_e, jnp.float32(delta))
    loss = m * (abs_e - 0.5 * m)

    def accumulate(vals):
        # Fold the whole tile into one vreg (pure VPU adds across sublane
        # groups; leading-dim reshape is layout-preserving), then one vreg add.
        acc_ref[...] += jnp.sum(vals.reshape(-1, 8, LANE), axis=0)

    if needs_mask:
        # Only the final (partially out-of-range) tile pays for masking.
        @pl.when(i != last)
        def _():
            accumulate(loss)

        @pl.when(i == last)
        def _():
            row = jax.lax.broadcasted_iota(jnp.int32, loss.shape, 0)
            valid = (i * row_tile + row) < rows_valid
            accumulate(jnp.where(valid, loss, 0.0))
    else:
        accumulate(loss)

    @pl.when(i == last)
    def _():
        out_ref[0, 0] = jnp.sum(acc_ref[...])


def huber_loss(inp, target, delta=1.0):
    """Mean Huber loss, matching the PyTorch HuberLoss.forward semantics."""
    assert inp.shape == target.shape
    n_elems = inp.size
    assert n_elems > 0
    out_dtype = jnp.result_type(inp.dtype, target.dtype)

    x = jnp.ravel(inp)
    t = jnp.ravel(target)

    n_main = (n_elems // LANE) * LANE
    tail = n_elems - n_main

    # < 128 trailing elements: tiny pure-JAX sum (no big-array pad/copy).
    tail_sum = jnp.float32(0.0)
    if tail:
        xt = x[n_main:].astype(jnp.float32)
        tt = t[n_main:].astype(jnp.float32)
        e = tt - xt
        a = jnp.abs(e)
        mt = jnp.minimum(a, jnp.float32(delta))
        tail_sum = jnp.sum(mt * (a - 0.5 * mt))

    main_sum = jnp.float32(0.0)
    if n_main:
        rows = n_main // LANE
        x2 = (x[:n_main] if tail else x).reshape(rows, LANE)
        t2 = (t[:n_main] if tail else t).reshape(rows, LANE)

        itemsize = max(jnp.dtype(x2.dtype).itemsize, jnp.dtype(t2.dtype).itemsize)
        sub = max(_sublane_multiple(x2.dtype), _sublane_multiple(t2.dtype), 8)

        # Dtype-scaled block: ~2 MiB per input.  2 inputs x 2 pipeline buffers
        # = 8 MiB, safely inside v5e's 16 MiB default scoped VMEM.
        max_rows = max(sub, TARGET_BLOCK_BYTES // (LANE * itemsize))
        row_tile = min(max_rows, _round_up(rows, sub))
        row_tile = _round_up(row_tile, sub)
        n_tiles = pl.cdiv(rows, row_tile)
        needs_mask = (rows % row_tile) != 0

        kernel = functools.partial(
            _huber_kernel,
            delta=float(delta),
            rows_valid=rows,
            row_tile=row_tile,
            needs_mask=needs_mask,
        )

        cost = pl.CostEstimate(
            flops=6 * n_main,
            transcendentals=0,
            bytes_accessed=2 * n_main * itemsize + 4,
        )

        out = pl.pallas_call(
            kernel,
            out_shape=jax.ShapeDtypeStruct((1, 1), jnp.float32),
            grid_spec=pltpu.PrefetchScalarGridSpec(
                num_scalar_prefetch=0,
                grid=(n_tiles,),
                in_specs=[
                    pl.BlockSpec((row_tile, LANE), lambda i: (i, 0)),
                    pl.BlockSpec((row_tile, LANE), lambda i: (i, 0)),
                ],
                out_specs=pl.BlockSpec((1, 1), lambda i: (0, 0),
                                       memory_space=pltpu.SMEM),
                scratch_shapes=[pltpu.VMEM((8, LANE), jnp.float32)],
            ),
            compiler_params=pltpu.CompilerParams(
                dimension_semantics=("arbitrary",),
            ),
            cost_estimate=cost,
        )(x2, t2)
        main_sum = out[0, 0]

    return ((main_sum + tail_sum) / jnp.float32(n_elems)).astype(out_dtype)


def _reference_huber(inp, target, delta=1.0):
    err = (target - inp).astype(jnp.float32)
    abs_e = jnp.abs(err)
    small = 0.5 * err * err
    large = delta * (abs_e - 0.5 * delta)
    return jnp.mean(jnp.where(abs_e < delta, small, large))


if __name__ == "__main__":
    key = jax.random.PRNGKey(0)
    k1, k2 = jax.random.split(key)
    # small shapes: e.g. batch of RUL predictions (2, 4, 16, 16)
    shape = (2, 4, 16, 16)
    pred = jax.random.normal(k1, shape, dtype=jnp.float32) * 2.0
    target = jax.random.normal(k2, shape, dtype=jnp.float32) * 2.0

    out = huber_loss(pred, target, delta=1.0)
    out = jax.block_until_ready(out)

    ref = _reference_huber(pred, target, delta=1.0)
    assert jnp.allclose(out, ref, rtol=1e-5, atol=1e-6), (out, ref)

    # also exercise a lane-misaligned size (tail path, no padding copies)
    n = 1000
    a = jax.random.normal(k1, (n,), dtype=jnp.float32) * 3.0
    b = jax.random.normal(k2, (n,), dtype=jnp.float32) * 3.0
    out2 = jax.block_until_ready(huber_loss(a, b, delta=1.0))
    ref2 = _reference_huber(a, b, delta=1.0)
    assert jnp.allclose(out2, ref2, rtol=1e-5, atol=1e-6), (out2, ref2)

    print("KERNEL_OK")
</pallas_src>

<mosaic_0001>
module attributes {stable_mosaic.version = 11 : i64} {
  func.func @_huber_kernel(%arg0: i32, %arg1: memref<16x128xf32, #tpu.memory_space<vmem>>, %arg2: memref<16x128xf32, #tpu.memory_space<vmem>>, %arg3: memref<1x1xf32, #tpu.memory_space<smem>>, %arg4: memref<8x128xf32, #tpu.memory_space<vmem>>) attributes {dimension_semantics = [#tpu.dimension_semantics<arbitrary>], iteration_bounds = array<i64: 1>, scalar_prefetch = 0 : i64, scratch_operands = 1 : i64, tpu.core_type = #tpu.core_type<tc>, window_params = [{transform_indices = @transform_0, window_bounds = array<i64: 16, 128>}, {transform_indices = @transform_1, window_bounds = array<i64: 16, 128>}, {transform_indices = @transform_2, window_bounds = array<i64: 1, 1>}]} {
    %c0_i32 = arith.constant 0 : i32
    %0 = arith.cmpi eq, %arg0, %c0_i32 : i32
    %1 = arith.extui %0 : i1 to i32
    %c0_i32_0 = arith.constant 0 : i32
    %2 = arith.cmpi ne, %1, %c0_i32_0 : i32
    scf.if %2 {
      %cst_12 = arith.constant 0.000000e+00 : f32
      %21 = vector.broadcast %cst_12 : f32 to vector<8x128xf32>
      %c0_13 = arith.constant 0 : index
      %c0_14 = arith.constant 0 : index
      %22 = vector.load %arg4[%c0_13, %c0_14] : memref<8x128xf32, #tpu.memory_space<vmem>>, vector<8x128xf32>
      tpu.vector_store %arg4[%c0_13, %c0_14], %21 {strides = array<i32>} : memref<8x128xf32, #tpu.memory_space<vmem>>, vector<8x128xf32>,
    } else {
    }
    %c0 = arith.constant 0 : index
    %c0_1 = arith.constant 0 : index
    %3 = vector.load %arg1[%c0, %c0_1] : memref<16x128xf32, #tpu.memory_space<vmem>>, vector<16x128xf32>
    %c0_2 = arith.constant 0 : index
    %c0_3 = arith.constant 0 : index
    %4 = vector.load %arg2[%c0_2, %c0_3] : memref<16x128xf32, #tpu.memory_space<vmem>>, vector<16x128xf32>
    %5 = arith.subf %4, %3 : vector<16x128xf32>
    %6 = math.absf %5 : vector<16x128xf32>
    %cst = arith.constant 1.000000e+00 : f32
    %7 = vector.broadcast %cst : f32 to vector<16x128xf32>
    %8 = arith.minimumf %6, %7 : vector<16x128xf32>
    %cst_4 = arith.constant 5.000000e-01 : f32
    %9 = vector.broadcast %cst_4 : f32 to vector<16x128xf32>
    %10 = arith.mulf %9, %8 : vector<16x128xf32>
    %11 = arith.subf %6, %10 : vector<16x128xf32>
    %12 = arith.mulf %8, %11 : vector<16x128xf32>
    %c0_5 = arith.constant 0 : index
    %c0_6 = arith.constant 0 : index
    %13 = vector.load %arg4[%c0_5, %c0_6] : memref<8x128xf32, #tpu.memory_space<vmem>>, vector<8x128xf32>
    %14 = vector.shape_cast %12 : vector<16x128xf32> to vector<2x8x128xf32>
    %cst_7 = arith.constant dense<0.000000e+00> : vector<8x128xf32>
    %15 = vector.multi_reduction <add>, %14, %cst_7 [0] : vector<2x8x128xf32> to vector<8x128xf32>
    %16 = arith.addf %13, %15 : vector<8x128xf32>
    %c0_8 = arith.constant 0 : index
    %c0_9 = arith.constant 0 : index
    %17 = vector.load %arg4[%c0_8, %c0_9] : memref<8x128xf32, #tpu.memory_space<vmem>>, vector<8x128xf32>
    tpu.vector_store %arg4[%c0_8, %c0_9], %16 {strides = array<i32>} : memref<8x128xf32, #tpu.memory_space<vmem>>, vector<8x128xf32>,
    %c0_i32_10 = arith.constant 0 : i32
    %18 = arith.cmpi eq, %arg0, %c0_i32_10 : i32
    %19 = arith.extui %18 : i1 to i32
    %c0_i32_11 = arith.constant 0 : i32
    %20 = arith.cmpi ne, %19, %c0_i32_11 : i32
    scf.if %20 {
      %c0_12 = arith.constant 0 : index
      %c0_13 = arith.constant 0 : index
      %21 = vector.load %arg4[%c0_12, %c0_13] : memref<8x128xf32, #tpu.memory_space<vmem>>, vector<8x128xf32>
      %22 = vector.shape_cast %21 : vector<8x128xf32> to vector<1x8x128xf32>
      %cst_14 = arith.constant dense<0.000000e+00> : vector<1xf32>
      %23 = vector.multi_reduction <add>, %22, %cst_14 [1, 2] : vector<1x8x128xf32> to vector<1xf32>
      %24 = vector.shape_cast %23 : vector<1xf32> to vector<1x1x1xf32>
      %25 = vector.extract %24[0, 0, 0] : f32 from vector<1x1x1xf32>
      %c0_15 = arith.constant 0 : index
      %c0_16 = arith.constant 0 : index
      %26 = memref.load %arg3[%c0_15, %c0_16] : memref<1x1xf32, #tpu.memory_space<smem>>
      memref.store %25, %arg3[%c0_15, %c0_16] : memref<1x1xf32, #tpu.memory_space<smem>>
    } else {
    }
    return
  }
  func.func @transform_0(%arg0: i32) -> (i32, i32) {
    %c0_i32 = arith.constant 0 : i32
    %c0_i32_0 = arith.constant 0 : i32
    return %arg0, %c0_i32 : i32, i32
  }
  func.func @transform_1(%arg0: i32) -> (i32, i32) {
    %c0_i32 = arith.constant 0 : i32
    %c0_i32_0 = arith.constant 0 : i32
    return %arg0, %c0_i32 : i32, i32
  }
  func.func @transform_2(%arg0: i32) -> (i32, i32) {
    %c0_i32 = arith.constant 0 : i32
    %c0_i32_0 = arith.constant 0 : i32
    %c0_i32_1 = arith.constant 0 : i32
    return %c0_i32, %c0_i32_0 : i32, i32
  }
}

</mosaic_0001>

<bundles_post_ra>
// kernel: tpu_custom_call.1
= control target key start
LH: loop header
LB: loop body
LE: loop exit
PB: predicated region body
PF: predicated region fallthrough
CT: control target
= control target key end

     0   :  { %7 = vsyncpa [#allocation4], 0  ;;  %s218_s0 = inlined_call_operand.hbm [shape: f32[16,128], index: 0, kind: input, shape index: {}]   ;;  %s219_s1 = inlined_call_operand.hbm [shape: f32[16,128], index: 1, kind: input, shape index: {}]   ;;  %s220_s2 = inlined_call_operand.hbm [shape: f32[1,1], index: 2, kind: output, shape index: {}]  }
   0x1   :  { %8 = vsyncpa [#allocation7], 0 }
   0x2   :  { %9 = vsyncpa [#allocation5], 0  ;;  %s162_s9 = smov [#allocation3]   ;;  %s102_s13 = scalar_lea.hbm %s218_s0, 256 }
   0x3   :  { %s15_s10 = sshll.u32 %s162_s9, 4  ;;  %p103_p0 = scmp.ne.s32.totalorder %s218_s0, %s102_s13  ;;  %s16_s10 = int_to_ptr.vmem [resolvable:$true] %s15_s10 }
   0x4   :  { %p106_p1 = scmp.lt.u32.totalorder %s102_s13, %s218_s0 }
   0x6   :  { %p108_p2 = pnand %p106_p1, %p103_p0 }
   0x8   :  { %111 = shalt.err (!%p108_p2)
}
   0x9   :  { %s112_s18 = scalar_lea.vmem %s16_s10, 256  ;;  %p117_p4 = scmp.lt.s32.totalorder %s16_s10, %s16_s10 }
   0xa   :  { %p113_p3 = scmp.ne.s32.totalorder %s16_s10, %s112_s18  ;;  %p118_p5 = scmp.lt.s32.totalorder %s112_s18, %s112_s18 }
   0xc   :  { %p119_p6 = por %p118_p5, %p117_p4 }
   0xe   :  { %p120_p7 = pnand %p119_p6, %p113_p3 }
  0x10   :  { %123 = shalt.err (!%p120_p7)
}
  0x11   :  { %s163_s19 = smov 128   ;;  %s164_s20 = smov 8  }
  0x12   :  { %21 = dma.hbm_to_vmem [thread:$0]  %s218_s0, 256, %s16_s10, [#allocation4], %s163_s19, %s163_s19, %s164_s20  }
  0x13   :  { %s165_s23 = smov [#allocation6]   ;;  %s124_s27 = scalar_lea.hbm %s219_s1, 256 }
  0x14   :  { %s27_s24 = sshll.u32 %s165_s23, 4  ;;  %p125_p8 = scmp.ne.s32.totalorder %s219_s1, %s124_s27  ;;  %s28_s24 = int_to_ptr.vmem [resolvable:$true] %s27_s24 }
  0x15   :  { %p128_p9 = scmp.lt.u32.totalorder %s124_s27, %s219_s1 }
  0x17   :  { %p130_p10 = pnand %p128_p9, %p125_p8 }
  0x19   :  { %133 = shalt.err (!%p130_p10)
}
  0x1a   :  { %s134_s4 = scalar_lea.vmem %s28_s24, 256  ;;  %p139_p12 = scmp.lt.s32.totalorder %s28_s24, %s28_s24 }
  0x1b   :  { %p135_p11 = scmp.ne.s32.totalorder %s28_s24, %s134_s4  ;;  %p140_p13 = scmp.lt.s32.totalorder %s134_s4, %s134_s4 }
  0x1d   :  { %p141_p0 = por %p140_p13, %p139_p12 }
  0x1f   :  { %p142_p1 = pnand %p141_p0, %p135_p11 }
  0x21   :  { %145 = shalt.err (!%p142_p1)
}
  0x22   :  { %33 = dma.hbm_to_vmem [thread:$0]  %s219_s1, 256, %s28_s24, [#allocation7], %s163_s19, %s163_s19, %s164_s20  }
  0x23   :  { %156 = dma.done.wait [#allocation4], 256  }
  0x24   :  { %157 = vsyncadd [#allocation4], 4294967040 }
  0x25   :  { %158 = dma.done.wait [#allocation7], 256  }
  0x26   :  { %159 = vsyncadd [#allocation7], 4294967040  ;;  %v45_v0 = vld [vmem:[#allocation3] sm:$0xff]  ;;  %v46_v1 = vld [vmem:[#allocation3 + $0x8] sm:$0xff]  ;;  %s146_s8 = scalar_lea.hbm %s220_s2, 16 }
  0x27   :  { %v47_v2 = vld [vmem:[#allocation6] sm:$0xff]  ;;  %v48_v3 = vld [vmem:[#allocation6 + $0x8] sm:$0xff]  ;;  %p147_p2 = scmp.ne.s32.totalorder %s220_s2, %s146_s8  ;;  %p150_p3 = scmp.lt.u32.totalorder %s146_s8, %s220_s2 }
  0x28   :  { %v49_v4 = vsub.f32 %v47_v2, %v45_v0  ;;  %v50_v5 = vsub.f32 %v48_v3, %v46_v1 }
  0x29   :  { %p152_p4 = pnand %p150_p3, %p147_p2 }
  0x2a   :  { %v51_v6 = vand.u32 2147483647, %v49_v4  ;;  %v52_v7 = vand.u32 2147483647, %v50_v5 }
  0x2c   :  { %v53_v8 = vmin.f32 %v51_v6, 1.0  ;;  %v54_v9 = vmin.f32 %v52_v7, 1.0 }
  0x2e   :  { %v55_v10 = vmul.f32 0.5, %v53_v8  ;;  %v56_v11 = vmul.f32 0.5, %v54_v9 }
  0x30   :  { %v57_v12 = vsub.f32 %v51_v6, %v55_v10  ;;  %v58_v13 = vsub.f32 %v52_v7, %v56_v11 }
  0x32   :  { %v59_v14 = vmul.f32 %v57_v12, %v53_v8  ;;  %v60_v15 = vmul.f32 %v58_v13, %v54_v9 }
  0x34   :  { %v62_v16 = vadd.f32 %v60_v15, %v59_v14 }
  0x36   :  { %69 = vadd.xlane.f32.xlu0 %v62_v16 }
  0xc3   :  { %v70_v17 = vpop.xlane.xlu0 %69 }
  0xc4   :  { %v71_v18 = vrot.slane %v70_v17, 4 }
  0xc6   :  { %v72_v19 = vadd.f32 %v71_v18, %v70_v17 }
  0xc8   :  { %v73_v20 = vrot.slane %v72_v19, 2 }
  0xca   :  { %v74_v21 = vadd.f32 %v73_v20, %v72_v19 }
  0xcc   :  { %v75_v22 = vrot.slane %v74_v21, 1 }
  0xce   :  { %v76_v23 = vadd.f32 %v75_v22, %v74_v21 }
  0xd0   :  { %95 = vpush %v76_v23 }
 0x101   :  { %s96_s1 = spop %95 }
 0x102   :  { %79 = sst [smem:[#allocation8]] %s96_s1 }
 0x103   :  { %155 = shalt.err (!%p152_p4)
}
 0x104   :  { %s166_s13 = smov [#allocation8]  }
 0x105   :  { %87 = dma.smem_to_hbm %s166_s13, 16, %s220_s2, [#allocation5]  }
 0x106   :  { %160 = dma.done.wait [#allocation5], 16  }
 0x107   :  { %161 = vsyncadd [#allocation5], 4294967280 }
 0x108   :  { %91 = sfence }
 0x109   :  { %92 = vsyncpa [#allocation4], 1 }
 0x10a   :  { %93 = vsyncpa [#allocation7], 1 }
 0x10b   :  { %94 = vsyncpa [#allocation5], 1 }

</bundles_post_ra>
